<compile_context>
chip_gen: v7x
topology: tpu7x:2x2x1
jax: 0.10.0
libtpu: 0.0.40
codegen_flags: <defaults>
</compile_context>

<pallas_src>
import jax
import jax.numpy as jnp
from jax.experimental import pallas as pl
from jax.experimental.pallas import tpu as pltpu

LANES = 128
MAX_TILE_ROWS = 4096  # 4096*128*4B = 2 MiB per f32 input block (x2 inputs x2 bufs = 8 MiB)


def _make_dice_kernel(n, tile_rows, blocks_per_split, need_mask):
    """Build the kernel with compile-time constants baked in."""
    full_rows = n // LANES          # number of completely valid rows
    rem_lanes = n % LANES           # valid lanes in the (single) partial row

    def kernel(logits_ref, targets_ref, out_ref):
        c = pl.program_id(0)        # parallel split (megacore on v7x)
        j = pl.program_id(1)        # sequential blocks within the split

        # Zero this split's accumulator block at the start of its j-loop.
        @pl.when(j == 0)
        def _():
            out_ref[...] = jnp.zeros_like(out_ref)

        x = logits_ref[...].astype(jnp.float32)
        t = targets_ref[...].astype(jnp.float32)
        p = jax.nn.sigmoid(x)

        if need_mask:
            # Logical (unclamped) global row index of each element in this tile.
            blk = c * blocks_per_split + j
            row = blk * tile_rows + jax.lax.broadcasted_iota(
                jnp.int32, (tile_rows, LANES), 0)
            lane = jax.lax.broadcasted_iota(
                jnp.int32, (tile_rows, LANES), 1)
            valid = (row < full_rows) | ((row == full_rows) & (lane < rem_lanes))
            # jnp.where (not multiply) so garbage/NaN in padded regions is dropped.
            p = jnp.where(valid, p, 0.0)
            t = jnp.where(valid, t, 0.0)

        # Sublane-only reductions per step; accumulate per-lane partials.
        out_ref[0, 0:1, :] += jnp.sum(p * t, axis=0, keepdims=True)
        out_ref[0, 1:2, :] += jnp.sum(p, axis=0, keepdims=True)
        out_ref[0, 2:3, :] += jnp.sum(t, axis=0, keepdims=True)

    return kernel


def dice_loss(logits, targets, smooth=1e-06):
    """Pallas implementation of DiceLoss.forward. Returns a scalar float32."""
    assert logits.shape == targets.shape
    n = int(logits.size)

    logits_flat = logits.reshape(-1)
    targets_flat = targets.reshape(-1)

    # Only pad (full copy) in the rare case the element count is not a multiple
    # of the lane width; pad values are ignored via the in-kernel mask.
    pad = (-n) % LANES
    if pad:
        logits_flat = jnp.pad(logits_flat, (0, pad))
        targets_flat = jnp.pad(targets_flat, (0, pad))

    rows = (n + pad) // LANES
    logits_2d = logits_flat.reshape(rows, LANES)
    targets_2d = targets_flat.reshape(rows, LANES)

    # Block row count: large streaming blocks; if the array is small, use the
    # full row extent (allowed even when not a multiple of 8).
    tile_rows = min(rows, MAX_TILE_ROWS)
    num_blocks = -(-rows // tile_rows)

    # Split the block stream across 2 cores (megacore on v7x; harmless elsewhere).
    n_split = 2 if num_blocks >= 2 else 1
    blocks_per_split = -(-num_blocks // n_split)

    # Mask only needed if the logical grid covers more elements than n.
    covered = n_split * blocks_per_split * tile_rows * LANES
    need_mask = covered != n

    kernel = _make_dice_kernel(n, tile_rows, blocks_per_split, need_mask)

    def in_idx(c, j):
        # Clamp phantom blocks (from the ceil split) to a valid block; their
        # contribution is zeroed by the in-kernel mask.
        return (jnp.minimum(c * blocks_per_split + j, num_blocks - 1), 0)

    partials = pl.pallas_call(
        kernel,
        out_shape=jax.ShapeDtypeStruct((n_split, 3, LANES), jnp.float32),
        grid_spec=pltpu.PrefetchScalarGridSpec(
            num_scalar_prefetch=0,
            grid=(n_split, blocks_per_split),
            in_specs=[
                pl.BlockSpec((tile_rows, LANES), in_idx),
                pl.BlockSpec((tile_rows, LANES), in_idx),
            ],
            out_specs=pl.BlockSpec((1, 3, LANES), lambda c, j: (c, 0, 0)),
        ),
        compiler_params=pltpu.CompilerParams(
            dimension_semantics=("parallel", "arbitrary")),
    )(logits_2d, targets_2d)

    # Tiny final reduction + dice formula in plain JAX.
    intersection = jnp.sum(partials[:, 0, :])
    p_sum = jnp.sum(partials[:, 1, :])
    t_sum = jnp.sum(partials[:, 2, :])
    dice = (2.0 * intersection + smooth) / (p_sum + t_sum + smooth)
    return (1.0 - dice).astype(jnp.float32)


def dice_loss_ref(logits, targets, smooth=1e-06):
    probs = jax.nn.sigmoid(logits.astype(jnp.float32)).reshape(-1)
    t = targets.astype(jnp.float32).reshape(-1)
    intersection = jnp.sum(probs * t)
    dice = (2.0 * intersection + smooth) / (jnp.sum(probs) + jnp.sum(t) + smooth)
    return 1.0 - dice


if __name__ == "__main__":
    key = jax.random.PRNGKey(0)
    k1, k2, k3, k4 = jax.random.split(key, 4)

    # NCHW-shaped inputs as the PyTorch module would receive.
    logits = jax.random.normal(k1, (2, 4, 16, 16), dtype=jnp.float32)
    targets = (jax.random.uniform(k2, (2, 4, 16, 16)) > 0.5).astype(jnp.float32)
    out = jax.block_until_ready(dice_loss(logits, targets))
    ref = jax.block_until_ready(dice_loss_ref(logits, targets))
    assert jnp.allclose(out, ref, atol=1e-5, rtol=1e-5), (out, ref)

    # Ragged element count (not a multiple of 128) exercises the in-kernel mask.
    logits2 = jax.random.normal(k3, (3, 37, 5), dtype=jnp.float32)
    targets2 = (jax.random.uniform(k4, (3, 37, 5)) > 0.5).astype(jnp.float32)
    out2 = jax.block_until_ready(dice_loss(logits2, targets2))
    ref2 = jax.block_until_ready(dice_loss_ref(logits2, targets2))
    assert jnp.allclose(out2, ref2, atol=1e-5, rtol=1e-5), (out2, ref2)

    print("KERNEL_OK")
</pallas_src>

<mosaic_0001>
module attributes {stable_mosaic.version = 11 : i64} {
  func.func @kernel(%arg0: i32, %arg1: i32, %arg2: memref<16x128xf32, #tpu.memory_space<vmem>>, %arg3: memref<16x128xf32, #tpu.memory_space<vmem>>, %arg4: memref<1x3x128xf32, #tpu.memory_space<vmem>>) attributes {dimension_semantics = [#tpu.dimension_semantics<parallel>, #tpu.dimension_semantics<arbitrary>], iteration_bounds = array<i64: 1, 1>, scalar_prefetch = 0 : i64, scratch_operands = 0 : i64, tpu.core_type = #tpu.core_type<tc>, window_params = [{transform_indices = @transform_0, window_bounds = array<i64: 16, 128>}, {transform_indices = @transform_1, window_bounds = array<i64: 16, 128>}, {transform_indices = @transform_2, window_bounds = array<i64: 1, 3, 128>}]} {
    %c0_i32 = arith.constant 0 : i32
    %0 = arith.cmpi eq, %arg1, %c0_i32 : i32
    %1 = arith.extui %0 : i1 to i32
    %c0_i32_0 = arith.constant 0 : i32
    %2 = arith.cmpi ne, %1, %c0_i32_0 : i32
    scf.if %2 {
      %cst_23 = arith.constant 0.000000e+00 : f32
      %35 = vector.broadcast %cst_23 : f32 to vector<1x3x128xf32>
      %c0_24 = arith.constant 0 : index
      %c0_25 = arith.constant 0 : index
      %c0_26 = arith.constant 0 : index
      %36 = vector.load %arg4[%c0_24, %c0_25, %c0_26] : memref<1x3x128xf32, #tpu.memory_space<vmem>>, vector<1x3x128xf32>
      tpu.vector_store %arg4[%c0_24, %c0_25, %c0_26], %35 {strides = array<i32>} : memref<1x3x128xf32, #tpu.memory_space<vmem>>, vector<1x3x128xf32>,
    } else {
    }
    %c0 = arith.constant 0 : index
    %c0_1 = arith.constant 0 : index
    %3 = vector.load %arg2[%c0, %c0_1] : memref<16x128xf32, #tpu.memory_space<vmem>>, vector<16x128xf32>
    %c0_2 = arith.constant 0 : index
    %c0_3 = arith.constant 0 : index
    %4 = vector.load %arg3[%c0_2, %c0_3] : memref<16x128xf32, #tpu.memory_space<vmem>>, vector<16x128xf32>
    %5 = arith.negf %3 : vector<16x128xf32>
    %6 = math.exp %5 : vector<16x128xf32>
    %cst = arith.constant 1.000000e+00 : f32
    %7 = vector.broadcast %cst : f32 to vector<16x128xf32>
    %8 = arith.addf %7, %6 : vector<16x128xf32>
    %9 = arith.divf %7, %8 : vector<16x128xf32>
    %c0_4 = arith.constant 0 : index
    %c0_5 = arith.constant 0 : index
    %c0_6 = arith.constant 0 : index
    %10 = vector.load %arg4[%c0_4, %c0_5, %c0_6] : memref<1x3x128xf32, #tpu.memory_space<vmem>>, vector<1x1x128xf32>
    %11 = vector.shape_cast %10 : vector<1x1x128xf32> to vector<1x128xf32>
    %12 = arith.mulf %9, %4 : vector<16x128xf32>
    %cst_7 = arith.constant dense<0.000000e+00> : vector<128xf32>
    %13 = vector.multi_reduction <add>, %12, %cst_7 [0] : vector<16x128xf32> to vector<128xf32>
    %14 = vector.shape_cast %13 : vector<128xf32> to vector<1x128xf32>
    %15 = arith.addf %11, %14 : vector<1x128xf32>
    %c0_8 = arith.constant 0 : index
    %c0_9 = arith.constant 0 : index
    %c0_10 = arith.constant 0 : index
    %16 = vector.load %arg4[%c0_8, %c0_9, %c0_10] : memref<1x3x128xf32, #tpu.memory_space<vmem>>, vector<1x1x128xf32>
    %17 = vector.shape_cast %16 : vector<1x1x128xf32> to vector<1x128xf32>
    %18 = vector.shape_cast %15 : vector<1x128xf32> to vector<1x1x128xf32>
    tpu.vector_store %arg4[%c0_8, %c0_9, %c0_10], %18 {strides = array<i32>} : memref<1x3x128xf32, #tpu.memory_space<vmem>>, vector<1x1x128xf32>,
    %c0_11 = arith.constant 0 : index
    %c1 = arith.constant 1 : index
    %c0_12 = arith.constant 0 : index
    %19 = vector.load %arg4[%c0_11, %c1, %c0_12] : memref<1x3x128xf32, #tpu.memory_space<vmem>>, vector<1x1x128xf32>
    %20 = vector.shape_cast %19 : vector<1x1x128xf32> to vector<1x128xf32>
    %cst_13 = arith.constant dense<0.000000e+00> : vector<128xf32>
    %21 = vector.multi_reduction <add>, %9, %cst_13 [0] : vector<16x128xf32> to vector<128xf32>
    %22 = vector.shape_cast %21 : vector<128xf32> to vector<1x128xf32>
    %23 = arith.addf %20, %22 : vector<1x128xf32>
    %c0_14 = arith.constant 0 : index
    %c1_15 = arith.constant 1 : index
    %c0_16 = arith.constant 0 : index
    %24 = vector.load %arg4[%c0_14, %c1_15, %c0_16] : memref<1x3x128xf32, #tpu.memory_space<vmem>>, vector<1x1x128xf32>
    %25 = vector.shape_cast %24 : vector<1x1x128xf32> to vector<1x128xf32>
    %26 = vector.shape_cast %23 : vector<1x128xf32> to vector<1x1x128xf32>
    tpu.vector_store %arg4[%c0_14, %c1_15, %c0_16], %26 {strides = array<i32>} : memref<1x3x128xf32, #tpu.memory_space<vmem>>, vector<1x1x128xf32>,
    %c0_17 = arith.constant 0 : index
    %c2 = arith.constant 2 : index
    %c0_18 = arith.constant 0 : index
    %27 = vector.load %arg4[%c0_17, %c2, %c0_18] : memref<1x3x128xf32, #tpu.memory_space<vmem>>, vector<1x1x128xf32>
    %28 = vector.shape_cast %27 : vector<1x1x128xf32> to vector<1x128xf32>
    %cst_19 = arith.constant dense<0.000000e+00> : vector<128xf32>
    %29 = vector.multi_reduction <add>, %4, %cst_19 [0] : vector<16x128xf32> to vector<128xf32>
    %30 = vector.shape_cast %29 : vector<128xf32> to vector<1x128xf32>
    %31 = arith.addf %28, %30 : vector<1x128xf32>
    %c0_20 = arith.constant 0 : index
    %c2_21 = arith.constant 2 : index
    %c0_22 = arith.constant 0 : index
    %32 = vector.load %arg4[%c0_20, %c2_21, %c0_22] : memref<1x3x128xf32, #tpu.memory_space<vmem>>, vector<1x1x128xf32>
    %33 = vector.shape_cast %32 : vector<1x1x128xf32> to vector<1x128xf32>
    %34 = vector.shape_cast %31 : vector<1x128xf32> to vector<1x1x128xf32>
    tpu.vector_store %arg4[%c0_20, %c2_21, %c0_22], %34 {strides = array<i32>} : memref<1x3x128xf32, #tpu.memory_space<vmem>>, vector<1x1x128xf32>,
    return
  }
  func.func @transform_0(%arg0: i32, %arg1: i32) -> (i32, i32) {
    %c1_i32 = arith.constant 1 : i32
    %0 = arith.muli %arg0, %c1_i32 : i32
    %1 = arith.addi %0, %arg1 : i32
    %c0_i32 = arith.constant 0 : i32
    %2 = arith.minsi %1, %c0_i32 : i32
    %c0_i32_0 = arith.constant 0 : i32
    %c0_i32_1 = arith.constant 0 : i32
    return %2, %c0_i32_0 : i32, i32
  }
  func.func @transform_1(%arg0: i32, %arg1: i32) -> (i32, i32) {
    %c1_i32 = arith.constant 1 : i32
    %0 = arith.muli %arg0, %c1_i32 : i32
    %1 = arith.addi %0, %arg1 : i32
    %c0_i32 = arith.constant 0 : i32
    %2 = arith.minsi %1, %c0_i32 : i32
    %c0_i32_0 = arith.constant 0 : i32
    %c0_i32_1 = arith.constant 0 : i32
    return %2, %c0_i32_0 : i32, i32
  }
  func.func @transform_2(%arg0: i32, %arg1: i32) -> (i32, i32, i32) {
    %c0_i32 = arith.constant 0 : i32
    %c0_i32_0 = arith.constant 0 : i32
    %c0_i32_1 = arith.constant 0 : i32
    return %arg0, %c0_i32, %c0_i32_0 : i32, i32, i32
  }
}

</mosaic_0001>

<bundles_post_ra>
// kernel: tpu_custom_call.1
= control target key start
LH: loop header
LB: loop body
LE: loop exit
PB: predicated region body
PF: predicated region fallthrough
CT: control target
= control target key end

     0   :  { %7 = vsyncpa [#allocation3], 0  ;;  %s250_s0 = inlined_call_operand.hbm [shape: f32[16,128], index: 0, kind: input, shape index: {}]   ;;  %s251_s1 = inlined_call_operand.hbm [shape: f32[16,128], index: 1, kind: input, shape index: {}]   ;;  %s252_s2 = inlined_call_operand.vmem [shape: f32[1,3,128], index: 2, kind: output, shape index: {}]  }
   0x1   :  { %8 = vsyncpa [#allocation5], 0  ;;  %s185_s9 = smov [#allocation2]   ;;  %s137_s13 = scalar_lea.hbm %s250_s0, 256 }
   0x2   :  { %s20_s10 = sshll.u32 %s185_s9, 4  ;;  %p138_p0 = scmp.ne.s32.totalorder %s250_s0, %s137_s13  ;;  %s21_s10 = int_to_ptr.vmem [resolvable:$true] %s20_s10 }
   0x3   :  { %p141_p1 = scmp.lt.u32.totalorder %s137_s13, %s250_s0 }
   0x5   :  { %p143_p2 = pnand %p141_p1, %p138_p0 }
   0x7   :  { %146 = shalt.err (!%p143_p2)
}
   0x8   :  { %s147_s18 = scalar_lea.vmem %s21_s10, 256  ;;  %p152_p4 = scmp.lt.s32.totalorder %s21_s10, %s21_s10 }
   0x9   :  { %p148_p3 = scmp.ne.s32.totalorder %s21_s10, %s147_s18  ;;  %p153_p5 = scmp.lt.s32.totalorder %s147_s18, %s147_s18 }
   0xb   :  { %p154_p6 = por %p153_p5, %p152_p4 }
   0xd   :  { %p155_p7 = pnand %p154_p6, %p148_p3 }
   0xf   :  { %158 = shalt.err (!%p155_p7)
}
  0x10   :  { %s186_s19 = smov 128   ;;  %s187_s20 = smov 8  }
  0x11   :  { %26 = dma.hbm_to_vmem [thread:$0]  %s250_s0, 256, %s21_s10, [#allocation3], %s186_s19, %s186_s19, %s187_s20  }
  0x12   :  { %s188_s23 = smov [#allocation4]   ;;  %s159_s27 = scalar_lea.hbm %s251_s1, 256 }
  0x13   :  { %s38_s24 = sshll.u32 %s188_s23, 4  ;;  %p160_p8 = scmp.ne.s32.totalorder %s251_s1, %s159_s27  ;;  %s39_s24 = int_to_ptr.vmem [resolvable:$true] %s38_s24 }
  0x14   :  { %p163_p9 = scmp.lt.u32.totalorder %s159_s27, %s251_s1 }
  0x16   :  { %p165_p10 = pnand %p163_p9, %p160_p8 }
  0x18   :  { %168 = shalt.err (!%p165_p10)
}
  0x19   :  { %s169_s4 = scalar_lea.vmem %s39_s24, 256  ;;  %p174_p12 = scmp.lt.s32.totalorder %s39_s24, %s39_s24 }
  0x1a   :  { %p170_p11 = scmp.ne.s32.totalorder %s39_s24, %s169_s4  ;;  %p175_p13 = scmp.lt.s32.totalorder %s169_s4, %s169_s4 }
  0x1c   :  { %p176_p0 = por %p175_p13, %p174_p12 }
  0x1e   :  { %p177_p1 = pnand %p176_p0, %p170_p11 }
  0x20   :  { %180 = shalt.err (!%p177_p1)
}
  0x21   :  { %44 = dma.hbm_to_vmem [thread:$0]  %s251_s1, 256, %s39_s24, [#allocation5], %s186_s19, %s186_s19, %s187_s20  }
  0x22   :  { %181 = dma.done.wait [#allocation3], 256  }
  0x23   :  { %182 = vsyncadd [#allocation3], 4294967040 }
  0x24   :  { %183 = dma.done.wait [#allocation5], 256  }
  0x25   :  { %184 = vsyncadd [#allocation5], 4294967040  ;;  %v189_v0 = vmov 0.0   ;;  %v64_v1 = vld [vmem:[#allocation2] sm:$0xff]  ;;  %v65_v2 = vld [vmem:[#allocation2 + $0x8] sm:$0xff] }
  0x26   :  { %63 = vst [vmem:[%s252_s2] sm:$0x7] %v189_v0  ;;  %v66_v3 = vld [vmem:[#allocation4] sm:$0xff]  ;;  %v67_v4 = vld [vmem:[#allocation4 + $0x8] sm:$0xff]  ;;  %v122_v5 = vmul.f32 -1.442695, %v64_v1 }
  0x27   :  { %v123_v6 = vmul.f32 -1.442695, %v65_v2  ;;  %v103_v7 = vadd.f32 %v67_v4, %v66_v3 }
  0x28   :  { %129 = vpow2.f32 %v122_v5 }
  0x29   :  { %131 = vpow2.f32 %v123_v6  ;;  %v104_v8 = vrot.slane %v103_v7, 4 }
  0x2b   :  { %v105_v9 = vadd.f32 %v104_v8, %v103_v7 }
  0x2d   :  { %v106_v10 = vrot.slane %v105_v9, 2  ;;  %v102_v14 = vld [vmem:[%s252_s2 + $0x2] sm:$0x1]  ;;  %v92_v35 = vld [vmem:[%s252_s2 + $0x1] sm:$0x1] }
  0x2e   :  { %v80_v38 = vld [vmem:[%s252_s2] sm:$0x1] }
  0x2f   :  { %v107_v11 = vadd.f32 %v106_v10, %v105_v9 }
  0x31   :  { %v108_v12 = vrot.slane %v107_v11, 1 }
  0x32   :  { %v130_v13 = vpop.eup %129 }
  0x33   :  { %v132_v15 = vpop.eup %131  ;;  %v74_v16 = vadd.f32 1.0, %v130_v13  ;;  %v109_v17 = vadd.f32 %v108_v12, %v107_v11 }
  0x34   :  { %v75_v18 = vadd.f32 1.0, %v132_v15 }
  0x35   :  { %133 = vrcp.f32 %v74_v16  ;;  %v110_v19 = vadd.f32 %v109_v17, %v102_v14 }
  0x36   :  { %135 = vrcp.f32 %v75_v18 }
  0x37   :  { %111 = vst [vmem:[%s252_s2 + $0x2] sm:$0x1] %v110_v19 }
  0x3f   :  { %v134_v20 = vpop.eup %133 }
  0x40   :  { %v136_v21 = vpop.eup %135  ;;  %v81_v22 = vmul.f32 %v134_v20, %v66_v3 }
  0x41   :  { %v82_v23 = vmul.f32 %v136_v21, %v67_v4  ;;  %v93_v24 = vadd.f32 %v136_v21, %v134_v20 }
  0x43   :  { %v83_v25 = vadd.f32 %v82_v23, %v81_v22  ;;  %v94_v26 = vrot.slane %v93_v24, 4 }
  0x45   :  { %v84_v27 = vrot.slane %v83_v25, 4  ;;  %v95_v28 = vadd.f32 %v94_v26, %v93_v24 }
  0x47   :  { %v85_v29 = vadd.f32 %v84_v27, %v83_v25  ;;  %v96_v30 = vrot.slane %v95_v28, 2 }
  0x49   :  { %v86_v31 = vrot.slane %v85_v29, 2  ;;  %v97_v32 = vadd.f32 %v96_v30, %v95_v28 }
  0x4b   :  { %v87_v33 = vadd.f32 %v86_v31, %v85_v29  ;;  %v98_v34 = vrot.slane %v97_v32, 1 }
  0x4d   :  { %v88_v36 = vrot.slane %v87_v33, 1  ;;  %v99_v37 = vadd.f32 %v98_v34, %v97_v32 }
  0x4f   :  { %v89_v39 = vadd.f32 %v88_v36, %v87_v33  ;;  %v100_v40 = vadd.f32 %v99_v37, %v92_v35 }
  0x51   :  { %v90_v41 = vadd.f32 %v89_v39, %v80_v38  ;;  %101 = vst [vmem:[%s252_s2 + $0x1] sm:$0x1] %v100_v40 }
  0x53   :  { %91 = vst [vmem:[%s252_s2] sm:$0x1] %v90_v41 }
  0x54   :  { %116 = vsyncpa [#allocation3], 1 }
  0x55   :  { %117 = vsyncpa [#allocation5], 1 }

</bundles_post_ra>
